<compile_context>
chip_gen: v7x
topology: tpu7x:2x2x1
jax: 0.10.0
libtpu: 0.0.40
codegen_flags: <defaults>
</compile_context>

<pallas_src>
import functools
import math

import jax
import jax.numpy as jnp
from jax.experimental import pallas as pl
from jax.experimental.pallas import tpu as pltpu


DROPOUT_P = 0.5
_GOLDEN = 0x9E3779B9  # Weyl constant for seed mixing


def _round_up(x, m):
    return (x + m - 1) // m * m


def _hash_u32(x):
    """murmur3/xxhash-style 32-bit finalizer — pure VPU integer ops."""
    x = x ^ (x >> 16)
    x = x * jnp.uint32(0x7FEB352D)
    x = x ^ (x >> 15)
    x = x * jnp.uint32(0x846CA68B)
    x = x ^ (x >> 16)
    return x


def _ffn_kernel(seed_ref, x_ref, w1_ref, b1_ref, w2_ref, b2_ref, o_ref,
                *, dropout_p, apply_dropout):
    # seed_ref : SMEM (1,) int32   (scalar-prefetched)
    # x_ref    : VMEM (TILE_M, D_in_p)
    # w1_ref   : VMEM (D_in_p, D_hid_p)   resident across the grid
    # b1_ref   : VMEM (1, D_hid_p)
    # w2_ref   : VMEM (D_hid_p, D_in_p)   resident across the grid
    # b2_ref   : VMEM (1, D_in_p)
    # o_ref    : VMEM (TILE_M, D_in_p)

    # First linear + ReLU (MXU, f32 accumulate).
    h = jnp.dot(x_ref[...], w1_ref[...], preferred_element_type=jnp.float32)
    h = jnp.maximum(h + b1_ref[...], 0.0)

    if apply_dropout and dropout_p > 0.0:
        tm, dh = h.shape
        # Counter-based PRNG: a unique 32-bit counter per element across the whole grid
        # (program_id mixed in so every row tile gets a fresh mask), hashed to random bits.
        blk = (pl.program_id(0) * tm).astype(jnp.uint32)
        row = jax.lax.broadcasted_iota(jnp.int32, (tm, dh), 0).astype(jnp.uint32)
        col = jax.lax.broadcasted_iota(jnp.int32, (tm, dh), 1).astype(jnp.uint32)
        ctr = (blk + row) * jnp.uint32(dh) + col
        key = seed_ref[0].astype(jnp.uint32) * jnp.uint32(_GOLDEN)
        bits = _hash_u32(ctr * jnp.uint32(0x85EBCA6B) + key)
        # Keep with prob (1 - p): direct uint32 threshold compare (no int->float convert).
        threshold = jnp.uint32(min(int(dropout_p * (1 << 32)), (1 << 32) - 1))
        keep = bits >= threshold
        h = jnp.where(keep, h * jnp.float32(1.0 / (1.0 - dropout_p)), 0.0)

    # Second linear (MXU, f32 accumulate).
    out = jnp.dot(h, w2_ref[...], preferred_element_type=jnp.float32) + b2_ref[...]
    o_ref[...] = out.astype(o_ref.dtype)


def feed_forward_layer(x, w1, b1, w2, b2, seed=0, *, dropout_p=DROPOUT_P,
                       training=True, tile_m=512):
    """x: (batch, seq, input_dim). w1: (input_dim, hidden). w2: (hidden, input_dim)."""
    batch, seq, d_in = x.shape
    d_hid = w1.shape[1]
    assert w1.shape == (d_in, d_hid) and w2.shape == (d_hid, d_in)
    m = batch * seq

    # Lane-dense padding: last dims -> multiples of 128, rows -> multiple of the row tile.
    d_in_p = _round_up(d_in, 128)
    d_hid_p = _round_up(d_hid, 128)
    m_pad = _round_up(m, 8)
    tile_m = min(tile_m, m_pad)
    m_pad = _round_up(m_pad, tile_m)

    f32 = jnp.float32
    x2d = jnp.zeros((m_pad, d_in_p), f32).at[:m, :d_in].set(x.reshape(m, d_in).astype(f32))
    w1p = jnp.zeros((d_in_p, d_hid_p), f32).at[:d_in, :d_hid].set(w1.astype(f32))
    b1p = jnp.zeros((1, d_hid_p), f32).at[0, :d_hid].set(b1.astype(f32))
    w2p = jnp.zeros((d_hid_p, d_in_p), f32).at[:d_hid, :d_in].set(w2.astype(f32))
    b2p = jnp.zeros((1, d_in_p), f32).at[0, :d_in].set(b2.astype(f32))
    seed_arr = jnp.asarray([seed], dtype=jnp.int32)

    grid = (m_pad // tile_m,)
    kernel = functools.partial(_ffn_kernel, dropout_p=float(dropout_p),
                               apply_dropout=bool(training))

    # VMEM budget: resident weights + biases + double-buffered x/out tiles + h intermediate.
    vmem_need = 4 * (2 * d_in_p * d_hid_p + d_in_p + d_hid_p
                     + 2 * 2 * tile_m * d_in_p + tile_m * d_hid_p)
    vmem_limit = int(min(100 * 2**20, max(32 * 2**20, 2 * vmem_need)))

    flops = 2 * 2 * m_pad * d_in_p * d_hid_p
    bytes_accessed = 4 * (2 * m_pad * d_in_p + 2 * d_in_p * d_hid_p + d_in_p + d_hid_p)

    out2d = pl.pallas_call(
        kernel,
        out_shape=jax.ShapeDtypeStruct((m_pad, d_in_p), x.dtype),
        grid_spec=pltpu.PrefetchScalarGridSpec(
            num_scalar_prefetch=1,
            grid=grid,
            in_specs=[
                pl.BlockSpec((tile_m, d_in_p), lambda i, seed: (i, 0)),   # x row tile
                pl.BlockSpec((d_in_p, d_hid_p), lambda i, seed: (0, 0)),  # W1 resident
                pl.BlockSpec((1, d_hid_p), lambda i, seed: (0, 0)),       # b1 resident
                pl.BlockSpec((d_hid_p, d_in_p), lambda i, seed: (0, 0)),  # W2 resident
                pl.BlockSpec((1, d_in_p), lambda i, seed: (0, 0)),        # b2 resident
            ],
            out_specs=pl.BlockSpec((tile_m, d_in_p), lambda i, seed: (i, 0)),
        ),
        compiler_params=pltpu.CompilerParams(
            dimension_semantics=("parallel",),
            vmem_limit_bytes=vmem_limit,
        ),
        cost_estimate=pl.CostEstimate(
            flops=flops, transcendentals=0, bytes_accessed=bytes_accessed),
    )(seed_arr, x2d, w1p, b1p, w2p, b2p)

    return out2d[:m, :d_in].reshape(batch, seq, d_in)


def init_params(key, input_dim, hidden_dim):
    """nn.Linear-style U(-1/sqrt(fan_in), 1/sqrt(fan_in)); weights stored transposed (in, out)."""
    k1, k2, k3, k4 = jax.random.split(key, 4)
    bound1 = 1.0 / math.sqrt(input_dim)
    bound2 = 1.0 / math.sqrt(hidden_dim)
    w1 = jax.random.uniform(k1, (input_dim, hidden_dim), jnp.float32, -bound1, bound1)
    b1 = jax.random.uniform(k2, (hidden_dim,), jnp.float32, -bound1, bound1)
    w2 = jax.random.uniform(k3, (hidden_dim, input_dim), jnp.float32, -bound2, bound2)
    b2 = jax.random.uniform(k4, (input_dim,), jnp.float32, -bound2, bound2)
    return w1, b1, w2, b2


if __name__ == "__main__":
    key = jax.random.PRNGKey(0)
    kx, kp = jax.random.split(key)

    batch, seq, input_dim, hidden_dim = 2, 8, 32, 64
    x = jax.random.normal(kx, (batch, seq, input_dim), dtype=jnp.float32)
    w1, b1, w2, b2 = init_params(kp, input_dim, hidden_dim)

    # Training path (dropout active, matches F.dropout's training=True default).
    out = feed_forward_layer(x, w1, b1, w2, b2, seed=0, training=True)
    out = jax.block_until_ready(out)
    assert out.shape == (batch, seq, input_dim)
    assert jnp.all(jnp.isfinite(out))

    # Eval path (dropout off) checked against a pure-JAX reference to validate the
    # matmul/bias/ReLU/pad-unpad plumbing exactly.
    out_eval = feed_forward_layer(x, w1, b1, w2, b2, seed=0, training=False)
    out_eval = jax.block_until_ready(out_eval)
    ref = jnp.maximum(x @ w1 + b1, 0.0) @ w2 + b2
    assert jnp.allclose(out_eval, ref, atol=1e-4, rtol=1e-4)

    print("KERNEL_OK")
</pallas_src>

<mosaic_0001>
module attributes {stable_mosaic.version = 11 : i64} {
  func.func @_ffn_kernel(%arg0: i32, %arg1: memref<1xi32, #tpu.memory_space<smem>>, %arg2: memref<16x128xf32, #tpu.memory_space<vmem>>, %arg3: memref<128x128xf32, #tpu.memory_space<vmem>>, %arg4: memref<1x128xf32, #tpu.memory_space<vmem>>, %arg5: memref<128x128xf32, #tpu.memory_space<vmem>>, %arg6: memref<1x128xf32, #tpu.memory_space<vmem>>, %arg7: memref<16x128xf32, #tpu.memory_space<vmem>>) attributes {dimension_semantics = [#tpu.dimension_semantics<parallel>], iteration_bounds = array<i64: 1>, scalar_prefetch = 1 : i64, scratch_operands = 0 : i64, tpu.core_type = #tpu.core_type<tc>, window_params = [{transform_indices = @transform_0, window_bounds = array<i64: 16, 128>}, {pipeline_mode = #tpu.pipeline_mode<synchronous>, transform_indices = @transform_1, window_bounds = array<i64: 128, 128>}, {pipeline_mode = #tpu.pipeline_mode<synchronous>, transform_indices = @transform_2, window_bounds = array<i64: 1, 128>}, {pipeline_mode = #tpu.pipeline_mode<synchronous>, transform_indices = @transform_3, window_bounds = array<i64: 128, 128>}, {pipeline_mode = #tpu.pipeline_mode<synchronous>, transform_indices = @transform_4, window_bounds = array<i64: 1, 128>}, {transform_indices = @transform_5, window_bounds = array<i64: 16, 128>}]} {
    %c0 = arith.constant 0 : index
    %c0_0 = arith.constant 0 : index
    %0 = vector.load %arg2[%c0, %c0_0] : memref<16x128xf32, #tpu.memory_space<vmem>>, vector<16x128xf32>
    %c0_1 = arith.constant 0 : index
    %c0_2 = arith.constant 0 : index
    %1 = vector.load %arg3[%c0_1, %c0_2] : memref<128x128xf32, #tpu.memory_space<vmem>>, vector<128x128xf32>
    %cst = arith.constant dense<0.000000e+00> : vector<16x128xf32>
    %2 = tpu.matmul %0, %1, %cst {dimension_numbers = #tpu.dot_dimension_numbers<[1], [0], [0], [1], [0, 0, 1, 1], [], []>} : vector<16x128xf32>, vector<128x128xf32>, vector<16x128xf32> -> vector<16x128xf32>
    %c0_3 = arith.constant 0 : index
    %c0_4 = arith.constant 0 : index
    %3 = vector.load %arg4[%c0_3, %c0_4] : memref<1x128xf32, #tpu.memory_space<vmem>>, vector<1x128xf32>
    %4 = vector.broadcast %3 : vector<1x128xf32> to vector<16x128xf32>
    %5 = arith.addf %2, %4 : vector<16x128xf32>
    %cst_5 = arith.constant 0.000000e+00 : f32
    %6 = vector.broadcast %cst_5 : f32 to vector<16x128xf32>
    %7 = arith.maximumf %5, %6 : vector<16x128xf32>
    %c16_i32 = arith.constant 16 : i32
    %8 = arith.muli %arg0, %c16_i32 : i32
    %9 = tpu.iota {dimensions = array<i32: 0>} : vector<16x128xi32>
    %10 = tpu.iota {dimensions = array<i32: 1>} : vector<16x128xi32>
    %11 = vector.broadcast %8 : i32 to vector<16x128xi32>
    %12 = arith.addi %11, %9 : vector<16x128xi32>
    %c128_i32 = arith.constant 128 : i32
    %13 = vector.broadcast %c128_i32 : i32 to vector<16x128xi32>
    %14 = arith.muli %12, %13 : vector<16x128xi32>
    %15 = arith.addi %14, %10 : vector<16x128xi32>
    %c0_6 = arith.constant 0 : index
    %16 = memref.load %arg1[%c0_6] : memref<1xi32, #tpu.memory_space<smem>>
    %c-1640531527_i32 = arith.constant -1640531527 : i32
    %17 = arith.muli %16, %c-1640531527_i32 : i32
    %c-2048144789_i32 = arith.constant -2048144789 : i32
    %18 = vector.broadcast %c-2048144789_i32 : i32 to vector<16x128xi32>
    %19 = arith.muli %15, %18 : vector<16x128xi32>
    %20 = vector.broadcast %17 : i32 to vector<16x128xi32>
    %21 = arith.addi %19, %20 : vector<16x128xi32>
    %c16_i32_7 = arith.constant 16 : i32
    %22 = vector.broadcast %c16_i32_7 : i32 to vector<16x128xi32>
    %23 = arith.shrui %21, %22 : vector<16x128xi32>
    %24 = arith.xori %21, %23 : vector<16x128xi32>
    %c2146121005_i32 = arith.constant 2146121005 : i32
    %25 = vector.broadcast %c2146121005_i32 : i32 to vector<16x128xi32>
    %26 = arith.muli %24, %25 : vector<16x128xi32>
    %c15_i32 = arith.constant 15 : i32
    %27 = vector.broadcast %c15_i32 : i32 to vector<16x128xi32>
    %28 = arith.shrui %26, %27 : vector<16x128xi32>
    %29 = arith.xori %26, %28 : vector<16x128xi32>
    %c-2073254261_i32 = arith.constant -2073254261 : i32
    %30 = vector.broadcast %c-2073254261_i32 : i32 to vector<16x128xi32>
    %31 = arith.muli %29, %30 : vector<16x128xi32>
    %c16_i32_8 = arith.constant 16 : i32
    %32 = vector.broadcast %c16_i32_8 : i32 to vector<16x128xi32>
    %33 = arith.shrui %31, %32 : vector<16x128xi32>
    %34 = arith.xori %31, %33 : vector<16x128xi32>
    %c-2147483648_i32 = arith.constant -2147483648 : i32
    %35 = vector.broadcast %c-2147483648_i32 : i32 to vector<16x128xi32>
    %36 = arith.cmpi uge, %34, %35 : vector<16x128xi32>
    %cst_9 = arith.constant 2.000000e+00 : f32
    %37 = vector.broadcast %cst_9 : f32 to vector<16x128xf32>
    %38 = arith.mulf %7, %37 : vector<16x128xf32>
    %cst_10 = arith.constant 0.000000e+00 : f32
    %39 = vector.broadcast %cst_10 : f32 to vector<16x128xf32>
    %40 = arith.select %36, %38, %39 : vector<16x128xi1>, vector<16x128xf32>
    %c0_11 = arith.constant 0 : index
    %c0_12 = arith.constant 0 : index
    %41 = vector.load %arg5[%c0_11, %c0_12] : memref<128x128xf32, #tpu.memory_space<vmem>>, vector<128x128xf32>
    %cst_13 = arith.constant dense<0.000000e+00> : vector<16x128xf32>
    %42 = tpu.matmul %40, %41, %cst_13 {dimension_numbers = #tpu.dot_dimension_numbers<[1], [0], [0], [1], [0, 0, 1, 1], [], []>} : vector<16x128xf32>, vector<128x128xf32>, vector<16x128xf32> -> vector<16x128xf32>
    %c0_14 = arith.constant 0 : index
    %c0_15 = arith.constant 0 : index
    %43 = vector.load %arg6[%c0_14, %c0_15] : memref<1x128xf32, #tpu.memory_space<vmem>>, vector<1x128xf32>
    %44 = vector.broadcast %43 : vector<1x128xf32> to vector<16x128xf32>
    %45 = arith.addf %42, %44 : vector<16x128xf32>
    %c0_16 = arith.constant 0 : index
    %c0_17 = arith.constant 0 : index
    %46 = vector.load %arg7[%c0_16, %c0_17] : memref<16x128xf32, #tpu.memory_space<vmem>>, vector<16x128xf32>
    tpu.vector_store %arg7[%c0_16, %c0_17], %45 {strides = array<i32>} : memref<16x128xf32, #tpu.memory_space<vmem>>, vector<16x128xf32>,
    return
  }
  func.func @transform_0(%arg0: i32, %arg1: memref<1xi32, #tpu.memory_space<smem>>) -> (i32, i32) {
    %c0_i32 = arith.constant 0 : i32
    %c0_i32_0 = arith.constant 0 : i32
    return %arg0, %c0_i32 : i32, i32
  }
  func.func @transform_1(%arg0: i32, %arg1: memref<1xi32, #tpu.memory_space<smem>>) -> (i32, i32) {
    %c0_i32 = arith.constant 0 : i32
    %c0_i32_0 = arith.constant 0 : i32
    %c0_i32_1 = arith.constant 0 : i32
    return %c0_i32, %c0_i32_0 : i32, i32
  }
  func.func @transform_2(%arg0: i32, %arg1: memref<1xi32, #tpu.memory_space<smem>>) -> (i32, i32) {
    %c0_i32 = arith.constant 0 : i32
    %c0_i32_0 = arith.constant 0 : i32
    %c0_i32_1 = arith.constant 0 : i32
    return %c0_i32, %c0_i32_0 : i32, i32
  }
  func.func @transform_3(%arg0: i32, %arg1: memref<1xi32, #tpu.memory_space<smem>>) -> (i32, i32) {
    %c0_i32 = arith.constant 0 : i32
    %c0_i32_0 = arith.constant 0 : i32
    %c0_i32_1 = arith.constant 0 : i32
    return %c0_i32, %c0_i32_0 : i32, i32
  }
  func.func @transform_4(%arg0: i32, %arg1: memref<1xi32, #tpu.memory_space<smem>>) -> (i32, i32) {
    %c0_i32 = arith.constant 0 : i32
    %c0_i32_0 = arith.constant 0 : i32
    %c0_i32_1 = arith.constant 0 : i32
    return %c0_i32, %c0_i32_0 : i32, i32
  }
  func.func @transform_5(%arg0: i32, %arg1: memref<1xi32, #tpu.memory_space<smem>>) -> (i32, i32) {
    %c0_i32 = arith.constant 0 : i32
    %c0_i32_0 = arith.constant 0 : i32
    return %arg0, %c0_i32 : i32, i32
  }
}

</mosaic_0001>

<bundles_post_ra>
// kernel: tpu_custom_call.1
= control target key start
LH: loop header
LB: loop body
LE: loop exit
PB: predicated region body
PF: predicated region fallthrough
CT: control target
= control target key end

     0   :  { %12 = vsyncpa [#allocation5], 0  ;;  %s717_s0 = inlined_call_operand.<no memory space> [shape: s32[1], index: 0, kind: input, shape index: {}]   ;;  %s718_s1 = inlined_call_operand.hbm [shape: f32[16,128], index: 1, kind: input, shape index: {}]   ;;  %s719_s2 = inlined_call_operand.hbm [shape: f32[128,128], index: 2, kind: input, shape index: {}]   ;;  %s720_s3 = inlined_call_operand.vmem [shape: f32[1,128], index: 3, kind: input, shape index: {}]   ;;  %s721_s4 = inlined_call_operand.hbm [shape: f32[128,128], index: 4, kind: input, shape index: {}]   ;;  %s722_s5 = inlined_call_operand.vmem [shape: f32[1,128], index: 5, kind: input, shape index: {}]   ;;  %s723_s6 = inlined_call_operand.hbm [shape: f32[16,128], index: 6, kind: output, shape index: {}]  }
   0x1   :  { %13 = vsyncpa [#allocation8], 0 }
   0x2   :  { %14 = vsyncpa [#allocation6], 0  ;;  %s600_s21 = smov [#allocation7]   ;;  %s601_s23 = smov [#allocation4]  }
   0x3   :  { %s32_s22 = sshll.u32 %s600_s21, 4  ;;  %s20_s24 = sshll.u32 %s601_s23, 4  ;;  %s33_s22 = int_to_ptr.vmem [resolvable:$true] %s32_s22  ;;  %s641_s24 = int_to_ptr.vmem [resolvable:$true] %s20_s24 }
   0x4   :  { %s506_s27 = scalar_lea.hbm %s719_s2, 2048 }
   0x5   :  { %p507_p0 = scmp.ne.s32.totalorder %s719_s2, %s506_s27  ;;  %p510_p1 = scmp.lt.u32.totalorder %s506_s27, %s719_s2 }
   0x7   :  { %p512_p2 = pnand %p510_p1, %p507_p0 }
   0x9   :  { %515 = shalt.err (!%p512_p2)
}
   0xa   :  { %s516_s8 = scalar_lea.vmem %s33_s22, 2048  ;;  %p521_p4 = scmp.lt.s32.totalorder %s33_s22, %s33_s22 }
   0xb   :  { %p517_p3 = scmp.ne.s32.totalorder %s33_s22, %s516_s8  ;;  %p522_p5 = scmp.lt.s32.totalorder %s516_s8, %s516_s8 }
   0xd   :  { %p523_p6 = por %p522_p5, %p521_p4 }
   0xf   :  { %p524_p7 = pnand %p523_p6, %p517_p3 }
  0x11   :  { %527 = shalt.err (!%p524_p7)
}
  0x12   :  { %s602_s9 = smov 128   ;;  %s603_s10 = smov 8  }
  0x13   :  { %38 = dma.hbm_to_vmem [thread:$0]  %s719_s2, 2048, %s33_s22, [#allocation8], %s602_s9, %s602_s9, %s603_s10  }
  0x14   :  { %s528_s15 = scalar_lea.hbm %s718_s1, 256 }
  0x15   :  { %p529_p8 = scmp.ne.s32.totalorder %s718_s1, %s528_s15  ;;  %p532_p9 = scmp.lt.u32.totalorder %s528_s15, %s718_s1 }
  0x17   :  { %p534_p10 = pnand %p532_p9, %p529_p8 }
  0x19   :  { %537 = shalt.err (!%p534_p10)
}
  0x1a   :  { %s538_s20 = scalar_lea.vmem %s641_s24, 256  ;;  %p543_p12 = scmp.lt.s32.totalorder %s641_s24, %s641_s24 }
  0x1b   :  { %p539_p11 = scmp.ne.s32.totalorder %s641_s24, %s538_s20  ;;  %p544_p13 = scmp.lt.s32.totalorder %s538_s20, %s538_s20 }
  0x1d   :  { %p545_p0 = por %p544_p13, %p543_p12 }
  0x1f   :  { %p546_p1 = pnand %p545_p0, %p539_p11 }
  0x21   :  { %549 = shalt.err (!%p546_p1)
}
  0x22   :  { %26 = dma.hbm_to_vmem [thread:$0]  %s718_s1, 256, %s641_s24, [#allocation5], %s602_s9, %s602_s9, %s603_s10  }
  0x23   :  { %s604_s22 = smov [#allocation9]   ;;  %s550_s27 = scalar_lea.hbm %s721_s4, 2048 }
  0x24   :  { %s46_s23 = sshll.u32 %s604_s22, 4  ;;  %p551_p2 = scmp.ne.s32.totalorder %s721_s4, %s550_s27  ;;  %s47_s23 = int_to_ptr.vmem [resolvable:$true] %s46_s23 }
  0x25   :  { %p554_p3 = scmp.lt.u32.totalorder %s550_s27, %s721_s4 }
  0x27   :  { %p556_p4 = pnand %p554_p3, %p551_p2 }
  0x29   :  { %559 = shalt.err (!%p556_p4)
}
  0x2a   :  { %s560_s8 = scalar_lea.vmem %s47_s23, 2048  ;;  %p565_p6 = scmp.lt.s32.totalorder %s47_s23, %s47_s23 }
  0x2b   :  { %p561_p5 = scmp.ne.s32.totalorder %s47_s23, %s560_s8  ;;  %p566_p7 = scmp.lt.s32.totalorder %s560_s8, %s560_s8 }
  0x2d   :  { %p567_p8 = por %p566_p7, %p565_p6 }
  0x2f   :  { %p568_p9 = pnand %p567_p8, %p561_p5 }
  0x31   :  { %571 = shalt.err (!%p568_p9)
}
  0x32   :  { %52 = dma.hbm_to_vmem [thread:$0]  %s721_s4, 2048, %s47_s23, [#allocation8], %s602_s9, %s602_s9, %s603_s10  }
  0x33   :  { %594 = dma.done.wait [#allocation5], 256  }
  0x34   :  { %595 = vsyncadd [#allocation5], 4294967040 }
  0x35   :  { %596 = dma.done.wait [#allocation8], 4096  }
  0x36   :  { %597 = vsyncadd [#allocation8], 4294963200  ;;  %v66_v0 = vld [vmem:[#allocation7] sm:$0xff]  ;;  %v67_v1 = vld [vmem:[#allocation7 + $0x8] sm:$0xff]  ;;  %v167_v50 = vlaneseq  ;;  %s180_s12 = smul.u32 2654435769, %s717_s0 }
  0x37   :  { %v68_v2 = vld [vmem:[#allocation7 + $0x10] sm:$0xff]  ;;  %v436_v3 = vpack.c.bf16 %v67_v1, %v66_v0  ;;  %v69_v4 = vld [vmem:[#allocation7 + $0x18] sm:$0xff]  ;;  %v70_v6 = vld [vmem:[#allocation7 + $0x20] sm:$0xff] }
  0x38   :  { %v440_v5 = vpack.c.bf16 %v69_v4, %v68_v2  ;;  %v71_v7 = vld [vmem:[#allocation7 + $0x28] sm:$0xff]  ;;  %v72_v9 = vld [vmem:[#allocation7 + $0x30] sm:$0xff]  ;;  %v73_v10 = vld [vmem:[#allocation7 + $0x38] sm:$0xff]  ;;  %v168_v51 = vshrl.u32 %v167_v50, 7  ;;  %v171_v53 = vand.u32 127, %v167_v50  ;;  %v183_v60 = vstv %s180_s12 }
  0x39   :  { %437 = vmatprep.subr.bf16.mxu0 %v436_v3  ;;  %v444_v8 = vpack.c.bf16 %v71_v7, %v70_v6  ;;  %v64_v11 = vld [vmem:[#allocation4] sm:$0xff]  ;;  %v208_v12 = vld [vmem:[#allocation9] sm:$0xff]  ;;  %v209_v13 = vld [vmem:[#allocation9 + $0x8] sm:$0xff]  ;;  %v448_v20 = vpack.c.bf16 %v73_v10, %v72_v9 }
  0x3a   :  { %439 = vmatpush3.bf16.msra.mxu0 %v436_v3  ;;  %398 = vmatprep.mubr.f32.mxu0 %v64_v11  ;;  %v210_v14 = vld [vmem:[#allocation9 + $0x10] sm:$0xff]  ;;  %v468_v15 = vpack.c.bf16 %v209_v13, %v208_v12  ;;  %v211_v16 = vld [vmem:[#allocation9 + $0x18] sm:$0xff]  ;;  %v212_v18 = vld [vmem:[#allocation9 + $0x20] sm:$0xff]  ;;  %v169_v52 = vadd.s32 8, %v168_v51  ;;  %v175_v54 = vmul.u32 128, %v168_v51 }
  0x3b   :  { %441 = vmatprep.subr.bf16.mxu0 %v440_v5  ;;  %v472_v17 = vpack.c.bf16 %v211_v16, %v210_v14  ;;  %v213_v19 = vld [vmem:[#allocation9 + $0x28] sm:$0xff]  ;;  %v74_v21 = vld [vmem:[#allocation7 + $0x40] sm:$0xff]  ;;  %v214_v24 = vld [vmem:[#allocation9 + $0x30] sm:$0xff] }
  0x3c   :  { %469 = vmatprep.subr.bf16.mxu1 %v468_v15  ;;  %v75_v22 = vld [vmem:[#allocation7 + $0x48] sm:$0xff]  ;;  %v476_v23 = vpack.c.bf16 %v213_v19, %v212_v18  ;;  %v215_v25 = vld [vmem:[#allocation9 + $0x38] sm:$0xff]  ;;  %v76_v27 = vld [vmem:[#allocation7 + $0x50] sm:$0xff]  ;;  %v176_v55 = vmul.u32 128, %v169_v52  ;;  %v177_v56 = vadd.s32 %v175_v54, %v171_v53 }
  0x3d   :  { %471 = vmatpush3.bf16.msra.mxu1 %v468_v15  ;;  %v452_v26 = vpack.c.bf16 %v75_v22, %v74_v21  ;;  %v77_v28 = vld [vmem:[#allocation7 + $0x58] sm:$0xff]  ;;  %v480_v29 = vpack.c.bf16 %v215_v25, %v214_v24  ;;  %v216_v30 = vld [vmem:[#allocation9 + $0x40] sm:$0xff]  ;;  %v217_v31 = vld [vmem:[#allocation9 + $0x48] sm:$0xff] }
  0x3e   :  { %443 = vmatpush3.bf16.msra.mxu0 %v440_v5  ;;  %473 = vmatprep.subr.bf16.mxu1 %v472_v17  ;;  %v456_v32 = vpack.c.bf16 %v77_v28, %v76_v27  ;;  %v78_v33 = vld [vmem:[#allocation7 + $0x60] sm:$0xff]  ;;  %v79_v34 = vld [vmem:[#allocation7 + $0x68] sm:$0xff]  ;;  %v484_v35 = vpack.c.bf16 %v217_v31, %v216_v30  ;;  %v218_v36 = vld [vmem:[#allocation9 + $0x50] sm:$0xff]  ;;  %v178_v57 = vadd.s32 %v176_v55, %v171_v53  ;;  %v181_v58 = vmul.u32 2246822507, %v177_v56 }
  0x3f   :  { %445 = vmatprep.subr.bf16.mxu0 %v444_v8  ;;  %v219_v37 = vld [vmem:[#allocation9 + $0x58] sm:$0xff]  ;;  %v460_v38 = vpack.c.bf16 %v79_v34, %v78_v33  ;;  %v80_v39 = vld [vmem:[#allocation7 + $0x70] sm:$0xff]  ;;  %v220_v44 = vld [vmem:[#allocation9 + $0x60] sm:$0xff] }
  0x40   :  { %v81_v40 = vld [vmem:[#allocation7 + $0x78] sm:$0xff]  ;;  %v488_v41 = vpack.c.bf16 %v219_v37, %v218_v36  ;;  %v221_v45 = vld [vmem:[#allocation9 + $0x68] sm:$0xff]  ;;  %v222_v47 = vld [vmem:[#allocation9 + $0x70] sm:$0xff]  ;;  %v182_v59 = vmul.u32 2246822507, %v178_v57  ;;  %v184_v61 = vadd.s32 %v183_v60, %v181_v58 }
  0x41   :  { %475 = vmatpush3.bf16.msra.mxu1 %v472_v17  ;;  %v464_v42 = vpack.c.bf16 %v81_v40, %v80_v39  ;;  %v65_v43 = vld [vmem:[#allocation4 + $0x8] sm:$0xff]  ;;  %v492_v46 = vpack.c.bf16 %v221_v45, %v220_v44  ;;  %v326_v12 = vld [vmem:[%s720_s3] ss:$0 sm:$0xff]  ;;  %s605_s3 = smov [#allocation10]  }
  0x42   :  { %447 = vmatpush3.bf16.msra.mxu0 %v444_v8  ;;  %477 = vmatprep.subr.bf16.mxu1 %v476_v23  ;;  %v223_v48 = vld [vmem:[#allocation9 + $0x78] sm:$0xff]  ;;  %v185_v62 = vadd.s32 %v183_v60, %v182_v59  ;;  %v186_v63 = vshrl.u32 %v184_v61, 16  ;;  %v327_v24 = vld [vmem:[%s722_s5] ss:$0 sm:$0xff]  ;;  %s313_s16 = sshll.u32 %s605_s3, 4  ;;  %s314_s16 = int_to_ptr.vmem [resolvable:$true] %s313_s16 }
  0x43   :  { %449 = vmatprep.subr.bf16.mxu0 %v448_v20  ;;  %v496_v49 = vpack.c.bf16 %v223_v48, %v222_v47  ;;  %s572_s17 = scalar_lea.vmem %s314_s16, 256  ;;  %p577_p11 = scmp.lt.s32.totalorder %s314_s16, %s314_s16 }
  0x44   :  { %v187_v0 = vshrl.u32 %v185_v62, 16  ;;  %v188_v1 = vxor.u32 %v186_v63, %v184_v61  ;;  %p573_p10 = scmp.ne.s32.totalorder %s314_s16, %s572_s17  ;;  %p578_p12 = scmp.lt.s32.totalorder %s572_s17, %s572_s17 }
  0x45   :  { %479 = vmatpush3.bf16.msra.mxu1 %v476_v23 }
  0x46   :  { %451 = vmatpush3.bf16.msra.mxu0 %v448_v20  ;;  %481 = vmatprep.subr.bf16.mxu1 %v480_v29  ;;  %v189_v2 = vxor.u32 %v187_v0, %v185_v62  ;;  %v190_v3 = vmul.u32 2146121005, %v188_v1  ;;  %p579_p13 = por %p578_p12, %p577_p11 }
  0x47   :  { %453 = vmatprep.subr.bf16.mxu0 %v452_v26 }
  0x48   :  { %v191_v4 = vmul.u32 2146121005, %v189_v2  ;;  %v192_v5 = vshrl.u32 %v190_v3, 15  ;;  %p580_p0 = pnand %p579_p13, %p573_p10 }
  0x49   :  { %483 = vmatpush3.bf16.msra.mxu1 %v480_v29 }
  0x4a   :  { %455 = vmatpush3.bf16.msra.mxu0 %v452_v26  ;;  %485 = vmatprep.subr.bf16.mxu1 %v484_v35  ;;  %v193_v6 = vshrl.u32 %v191_v4, 15  ;;  %v194_v7 = vxor.u32 %v192_v5, %v190_v3 }
  0x4b   :  { %457 = vmatprep.subr.bf16.mxu0 %v456_v32 }
  0x4c   :  { %v195_v8 = vxor.u32 %v193_v6, %v191_v4  ;;  %v196_v9 = vmul.u32 2221713035, %v194_v7 }
  0x4d   :  { %487 = vmatpush3.bf16.msra.mxu1 %v484_v35 }
  0x4e   :  { %459 = vmatpush3.bf16.msra.mxu0 %v456_v32  ;;  %489 = vmatprep.subr.bf16.mxu1 %v488_v41  ;;  %v197_v10 = vmul.u32 2221713035, %v195_v8  ;;  %v198_v11 = vshrl.u32 %v196_v9, 16 }
  0x4f   :  { %461 = vmatprep.subr.bf16.mxu0 %v460_v38 }
  0x50   :  { %v199_v13 = vshrl.u32 %v197_v10, 16  ;;  %v200_v17 = vxor.u32 %v198_v11, %v196_v9 }
  0x51   :  { %491 = vmatpush3.bf16.msra.mxu1 %v488_v41 }
  0x52   :  { %463 = vmatpush3.bf16.msra.mxu0 %v460_v38  ;;  %493 = vmatprep.subr.bf16.mxu1 %v492_v46  ;;  %v201_v19 = vxor.u32 %v199_v13, %v197_v10  ;;  %vm202_vm0 = vcmp.ge.u32.totalorder %v200_v17, 2147483648 }
  0x53   :  { %465 = vmatprep.subr.bf16.mxu0 %v464_v42 }
  0x54   :  { %vm203_vm1 = vcmp.ge.u32.totalorder %v201_v19, 2147483648 }
  0x55   :  { %495 = vmatpush3.bf16.msra.mxu1 %v492_v46 }
  0x56   :  { %467 = vmatpush3.bf16.msra.mxu0 %v464_v42  ;;  %497 = vmatprep.subr.bf16.mxu1 %v496_v49 }
  0x59   :  { %399 = vmatmul.mubr.f32.vlgmr.msra.gmra.mrb[0].mxu0 %v65_v43  ;;  %499 = vmatpush3.bf16.msra.mxu1 %v496_v49 }
 0x12c   :  { %v400_v14 = vpop.f32.mrb[0].mxu0 }
 0x12d   :  { %v161_v15 = vadd.f32 %v400_v14, %v326_v12  ;;  %v155_v16 = vpop.f32.mrb[1].mxu0 }
 0x12e   :  { %v156_v18 = vadd.f32 %v326_v12, %v155_v16 }
 0x12f   :  { %v165_v20 = vmax.f32 %v161_v15, 0.0 }
 0x130   :  { %v164_v21 = vmax.f32 %v156_v18, 0.0 }
 0x131   :  { %v205_v23 = vmul.f32 2.0, %v165_v20 }
 0x132   :  { %v204_v22 = vmul.f32 2.0, %v164_v21 }
 0x134   :  { %433 = vmatprep.mubr.msk.f32.mxu1 %vm202_vm0, %v204_v22 }
 0x135   :  { %434 = vmatmul.mubr.msk.f32.vlgmr.msra.gmra.mrb[0].mxu1 %vm203_vm1, %v205_v23 }
 0x208   :  { %v435_v25 = vpop.f32.mrb[0].mxu1 }
 0x209   :  { %v303_v26 = vadd.f32 %v435_v25, %v327_v24  ;;  %v297_v27 = vpop.f32.mrb[1].mxu1 }
 0x20a   :  { %v298_v28 = vadd.f32 %v327_v24, %v297_v27 }
 0x20b   :  { %307 = vst [vmem:[#allocation10 + $0x8] sm:$0xff] %v303_v26 }
 0x20c   :  { %306 = vst [vmem:[#allocation10] sm:$0xff] %v298_v28 }
 0x20d   :  { %583 = shalt.err (!%p580_p0)
}
 0x20e   :  { %s584_s5 = scalar_lea.hbm %s723_s6, 256 }
 0x20f   :  { %p585_p1 = scmp.ne.s32.totalorder %s723_s6, %s584_s5  ;;  %p588_p2 = scmp.lt.u32.totalorder %s584_s5, %s723_s6 }
 0x211   :  { %p590_p3 = pnand %p588_p2, %p585_p1 }
 0x213   :  { %593 = shalt.err (!%p590_p3)
}
 0x214   :  { %319 = dma.vmem_to_hbm [thread:$0]  %s314_s16, 256, %s723_s6, [#allocation6], %s602_s9, %s602_s9, %s603_s10  }
 0x215   :  { %598 = dma.done.wait [#allocation6], 256  }
 0x216   :  { %599 = vsyncadd [#allocation6], 4294967040 }
 0x217   :  { %323 = vsyncpa [#allocation5], 1 }
 0x218   :  { %324 = vsyncpa [#allocation8], 1 }
 0x219   :  { %325 = vsyncpa [#allocation6], 1 }

</bundles_post_ra>
